<compile_context>
chip_gen: v7x
topology: tpu7x:2x2x1
jax: 0.10.0
libtpu: 0.0.40
codegen_flags: <defaults>
</compile_context>

<pallas_src>
import math

import jax
import jax.numpy as jnp
from jax.experimental import pallas as pl
from jax.experimental.pallas import tpu as pltpu


def _round_up(x, m):
    return ((x + m - 1) // m) * m


def _bayes_conv_matmul_kernel(p_ref, wmu_ref, wsig_ref, weps_ref,
                              bmu_ref, bsig_ref, beps_ref, o_ref):
    """One (TM, O_pad) output tile: reparam (VPU) + GEMM (MXU) + bias add."""
    # f32 reparameterization on the VPU (kept f32 even when the MXU operands
    # are bf16 -- v5e has no native bf16 VPU path).
    w = wmu_ref[...] + weps_ref[...] * wsig_ref[...]      # (K_pad, O_pad)
    b = bmu_ref[...] + beps_ref[...] * bsig_ref[...]      # (1, O_pad)
    p = p_ref[...]                                        # (TM, K_pad)
    acc = jnp.dot(p, w.astype(p.dtype), preferred_element_type=jnp.float32)
    o_ref[...] = (acc + b).astype(o_ref.dtype)


def bayes_conv2d(x, weight_mu, weight_sigma, weight_eps,
                 bias_mu, bias_sigma, bias_eps,
                 stride=(1, 1), padding=(1, 1), dilation=(1, 1),
                 mxu_dtype=None, block_m=None,
                 vmem_budget_bytes=48 * 1024 * 1024):
    """Bayesian conv2d forward. groups=1, padding_mode='zeros'. NCHW in/out."""
    N, C, H, W = x.shape
    O, Cw, KH, KW = weight_mu.shape
    assert Cw == C, "groups != 1 not implemented"
    sh, sw = stride
    ph, pw = padding
    dh, dw = dilation
    OH = (H + 2 * ph - dh * (KH - 1) - 1) // sh + 1
    OW = (W + 2 * pw - dw * (KW - 1) - 1) // sw + 1

    # ---- glue: zero-pad + im2col (data movement only, no FLOPs) ----
    # TODO(synk): fuse the patch extraction into the kernel (manual DMA of x
    # rows with halo) to avoid the KH*KW-fold HBM expansion of `patches`.
    xp = jnp.pad(x, ((0, 0), (0, 0), (ph, ph), (pw, pw)))
    cols = []
    for kh in range(KH):
        for kw in range(KW):
            hs = kh * dh
            ws = kw * dw
            cols.append(xp[:, :, hs:hs + sh * OH:sh, ws:ws + sw * OW:sw])
    # (N, C, KH*KW, OH, OW) -> (N, OH, OW, C, KH*KW) -> (M, K)
    patches = jnp.stack(cols, axis=2)
    patches = patches.transpose(0, 3, 4, 1, 2).reshape(N * OH * OW, C * KH * KW)

    M = N * OH * OW
    K = C * KH * KW
    K_pad = _round_up(K, 128)   # lane-aligned contraction dim
    O_pad = _round_up(O, 128)   # lane-dense output dim (unmasked vst)

    # Weights pre-transposed to (K, O) (MXU RHS layout, no in-kernel .T) and
    # zero-padded so padded rows/cols contribute exactly 0.
    def _w_ko(w):
        w = w.reshape(O, K).T
        return jnp.pad(w, ((0, K_pad - K), (0, O_pad - O)))

    wmu_ko = _w_ko(weight_mu)
    wsig_ko = _w_ko(weight_sigma)
    weps_ko = _w_ko(weight_eps)

    def _b_1o(b):
        return jnp.pad(b.reshape(1, O), ((0, 0), (0, O_pad - O)))

    bmu2 = _b_1o(bias_mu)
    bsig2 = _b_1o(bias_sigma)
    beps2 = _b_1o(bias_eps)

    # ---- tile size over M: keep double-buffered in/out tiles + resident
    # weights inside the VMEM budget (budget <= 48 MiB also fits v7x) ----
    bpe_p = 2 if mxu_dtype == jnp.bfloat16 else x.dtype.itemsize
    bpe_o = x.dtype.itemsize
    resident = 3 * K_pad * O_pad * 4 + 3 * O_pad * 4
    per_row = 2 * (K_pad * bpe_p + O_pad * bpe_o)   # 2-deep pipeline
    if block_m is None:
        tm_cap = max((vmem_budget_bytes - resident) // per_row, 8)
        TM = min(_round_up(M, 8), 1024, (tm_cap // 8) * 8)
    else:
        TM = _round_up(block_m, 8)
    TM = max(TM, 8)
    M_pad = _round_up(M, TM)

    patches = jnp.pad(patches, ((0, M_pad - M), (0, K_pad - K)))
    if mxu_dtype is not None:
        patches = patches.astype(mxu_dtype)

    grid = (M_pad // TM,)
    needed = resident + TM * per_row
    vmem_limit = int(min(max(2 * needed, 16 * 1024 * 1024), 48 * 1024 * 1024))

    cost = pl.CostEstimate(
        flops=2 * M_pad * K_pad * O_pad,
        transcendentals=0,
        bytes_accessed=int(patches.size * patches.dtype.itemsize
                           + 3 * K_pad * O_pad * 4 + 3 * O_pad * 4
                           + M_pad * O_pad * x.dtype.itemsize),
    )

    out_flat = pl.pallas_call(
        _bayes_conv_matmul_kernel,
        out_shape=jax.ShapeDtypeStruct((M_pad, O_pad), x.dtype),
        grid=grid,
        in_specs=[
            pl.BlockSpec((TM, K_pad), lambda i: (i, 0)),       # patches tile
            pl.BlockSpec((K_pad, O_pad), lambda i: (0, 0)),    # w_mu  (resident)
            pl.BlockSpec((K_pad, O_pad), lambda i: (0, 0)),    # w_sig (resident)
            pl.BlockSpec((K_pad, O_pad), lambda i: (0, 0)),    # w_eps (resident)
            pl.BlockSpec((1, O_pad), lambda i: (0, 0)),        # b_mu
            pl.BlockSpec((1, O_pad), lambda i: (0, 0)),        # b_sig
            pl.BlockSpec((1, O_pad), lambda i: (0, 0)),        # b_eps
        ],
        out_specs=pl.BlockSpec((TM, O_pad), lambda i: (i, 0)),
        compiler_params=pltpu.CompilerParams(
            dimension_semantics=("parallel",),
            vmem_limit_bytes=vmem_limit),
        cost_estimate=cost,
    )(patches, wmu_ko, wsig_ko, weps_ko, bmu2, bsig2, beps2)

    # Strip padding, (M, O) -> (N, O, OH, OW)  [back to NCHW]
    out = out_flat[:M, :O].reshape(N, OH, OW, O)
    return out.transpose(0, 3, 1, 2)


def _init_params(key, in_channels, out_channels, kernel_size,
                 prior_mu=0.0, prior_sigma=0.1, bias_mu_prior=0.0, prior=True):
    """Deterministic parameter init mirroring _BayesConvNd.reset_parameters."""
    KH, KW = kernel_size
    k_wmu, k_wsig, k_bsig, k_bmu = jax.random.split(key, 4)
    w_shape = (out_channels, in_channels, KH, KW)

    # xavier_uniform_ with gain=0.001 (prior_mu is a scalar here)
    fan_in = in_channels * KH * KW
    fan_out = out_channels * KH * KW
    bound = 0.001 * math.sqrt(6.0 / (fan_in + fan_out))
    weight_mu = jax.random.uniform(k_wmu, w_shape, jnp.float32, -bound, bound)
    weight_sigma = jax.random.uniform(k_wsig, w_shape, jnp.float32, -bound, bound)
    # bias_sigma ~ N(0, 1e-4), bias_mu ~ N(0, 1e-5)
    bias_sigma = 1e-4 * jax.random.normal(k_bsig, (out_channels,), jnp.float32)
    bias_mu = 1e-5 * jax.random.normal(k_bmu, (out_channels,), jnp.float32)
    if not prior:
        weight_sigma = jnp.full(w_shape, prior_sigma, jnp.float32)
        bias_sigma = jnp.full((out_channels,), prior_sigma, jnp.float32)
    return weight_mu, weight_sigma, bias_mu, bias_sigma


if __name__ == "__main__":
    # BayesConv2d(0.0, 0.1, 4, 8, 3, stride=1, padding=1) on (2, 4, 16, 16).
    N, C, H, W = 2, 4, 16, 16
    O, KH, KW = 8, 3, 3
    stride, padding, dilation = (1, 1), (1, 1), (1, 1)

    key = jax.random.PRNGKey(0)
    k_x, k_p, k_we, k_be = jax.random.split(key, 4)

    x = jax.random.normal(k_x, (N, C, H, W), jnp.float32)
    weight_mu, weight_sigma, bias_mu, bias_sigma = _init_params(
        k_p, C, O, (KH, KW), prior_mu=0.0, prior_sigma=0.1, prior=True)

    # eps = randn_like(...) — drawn outside the kernel for determinism.
    weight_eps = jax.random.normal(k_we, weight_mu.shape, jnp.float32)
    bias_eps = jax.random.normal(k_be, bias_mu.shape, jnp.float32)

    # block_m=128 -> 4 grid steps over M=512, exercising the pipelined grid.
    out = bayes_conv2d(x, weight_mu, weight_sigma, weight_eps,
                       bias_mu, bias_sigma, bias_eps,
                       stride=stride, padding=padding, dilation=dilation,
                       block_m=128)
    out = jax.block_until_ready(out)

    # Reference check with XLA's conv (same sampled weight/bias).
    w = weight_mu + weight_eps * weight_sigma
    b = bias_mu + bias_eps * bias_sigma
    ref = jax.lax.conv_general_dilated(
        x, w, window_strides=stride, padding=[(1, 1), (1, 1)],
        rhs_dilation=dilation,
        dimension_numbers=("NCHW", "OIHW", "NCHW"))
    ref = ref + b[None, :, None, None]

    assert out.shape == (N, O, H, W), out.shape
    assert jnp.allclose(out, ref, atol=1e-4, rtol=1e-4), (
        float(jnp.max(jnp.abs(out - ref))))
    print("KERNEL_OK")
</pallas_src>

<mosaic_0001>
module attributes {stable_mosaic.version = 11 : i64} {
  func.func @_bayes_conv_matmul_kernel(%arg0: i32, %arg1: memref<128x128xf32, #tpu.memory_space<vmem>>, %arg2: memref<128x128xf32, #tpu.memory_space<vmem>>, %arg3: memref<128x128xf32, #tpu.memory_space<vmem>>, %arg4: memref<128x128xf32, #tpu.memory_space<vmem>>, %arg5: memref<1x128xf32, #tpu.memory_space<vmem>>, %arg6: memref<1x128xf32, #tpu.memory_space<vmem>>, %arg7: memref<1x128xf32, #tpu.memory_space<vmem>>, %arg8: memref<128x128xf32, #tpu.memory_space<vmem>>) attributes {dimension_semantics = [#tpu.dimension_semantics<parallel>], iteration_bounds = array<i64: 4>, scalar_prefetch = 0 : i64, scratch_operands = 0 : i64, tpu.core_type = #tpu.core_type<tc>, window_params = [{transform_indices = @transform_0, window_bounds = array<i64: 128, 128>}, {pipeline_mode = #tpu.pipeline_mode<synchronous>, transform_indices = @transform_1, window_bounds = array<i64: 128, 128>}, {pipeline_mode = #tpu.pipeline_mode<synchronous>, transform_indices = @transform_2, window_bounds = array<i64: 128, 128>}, {pipeline_mode = #tpu.pipeline_mode<synchronous>, transform_indices = @transform_3, window_bounds = array<i64: 128, 128>}, {pipeline_mode = #tpu.pipeline_mode<synchronous>, transform_indices = @transform_4, window_bounds = array<i64: 1, 128>}, {pipeline_mode = #tpu.pipeline_mode<synchronous>, transform_indices = @transform_5, window_bounds = array<i64: 1, 128>}, {pipeline_mode = #tpu.pipeline_mode<synchronous>, transform_indices = @transform_6, window_bounds = array<i64: 1, 128>}, {transform_indices = @transform_7, window_bounds = array<i64: 128, 128>}]} {
    %c0 = arith.constant 0 : index
    %c0_0 = arith.constant 0 : index
    %0 = vector.load %arg2[%c0, %c0_0] : memref<128x128xf32, #tpu.memory_space<vmem>>, vector<128x128xf32>
    %c0_1 = arith.constant 0 : index
    %c0_2 = arith.constant 0 : index
    %1 = vector.load %arg4[%c0_1, %c0_2] : memref<128x128xf32, #tpu.memory_space<vmem>>, vector<128x128xf32>
    %c0_3 = arith.constant 0 : index
    %c0_4 = arith.constant 0 : index
    %2 = vector.load %arg3[%c0_3, %c0_4] : memref<128x128xf32, #tpu.memory_space<vmem>>, vector<128x128xf32>
    %3 = arith.mulf %1, %2 : vector<128x128xf32>
    %4 = arith.addf %0, %3 : vector<128x128xf32>
    %c0_5 = arith.constant 0 : index
    %c0_6 = arith.constant 0 : index
    %5 = vector.load %arg5[%c0_5, %c0_6] : memref<1x128xf32, #tpu.memory_space<vmem>>, vector<1x128xf32>
    %c0_7 = arith.constant 0 : index
    %c0_8 = arith.constant 0 : index
    %6 = vector.load %arg7[%c0_7, %c0_8] : memref<1x128xf32, #tpu.memory_space<vmem>>, vector<1x128xf32>
    %c0_9 = arith.constant 0 : index
    %c0_10 = arith.constant 0 : index
    %7 = vector.load %arg6[%c0_9, %c0_10] : memref<1x128xf32, #tpu.memory_space<vmem>>, vector<1x128xf32>
    %8 = arith.mulf %6, %7 : vector<1x128xf32>
    %9 = arith.addf %5, %8 : vector<1x128xf32>
    %c0_11 = arith.constant 0 : index
    %c0_12 = arith.constant 0 : index
    %10 = vector.load %arg1[%c0_11, %c0_12] : memref<128x128xf32, #tpu.memory_space<vmem>>, vector<128x128xf32>
    %cst = arith.constant dense<0.000000e+00> : vector<128x128xf32>
    %11 = tpu.matmul %10, %4, %cst {dimension_numbers = #tpu.dot_dimension_numbers<[1], [0], [0], [1], [0, 0, 1, 1], [], []>} : vector<128x128xf32>, vector<128x128xf32>, vector<128x128xf32> -> vector<128x128xf32>
    %12 = vector.broadcast %9 : vector<1x128xf32> to vector<128x128xf32>
    %13 = arith.addf %11, %12 : vector<128x128xf32>
    %c0_13 = arith.constant 0 : index
    %c0_14 = arith.constant 0 : index
    %14 = vector.load %arg8[%c0_13, %c0_14] : memref<128x128xf32, #tpu.memory_space<vmem>>, vector<128x128xf32>
    tpu.vector_store %arg8[%c0_13, %c0_14], %13 {strides = array<i32>} : memref<128x128xf32, #tpu.memory_space<vmem>>, vector<128x128xf32>,
    return
  }
  func.func @transform_0(%arg0: i32) -> (i32, i32) {
    %c0_i32 = arith.constant 0 : i32
    %c0_i32_0 = arith.constant 0 : i32
    return %arg0, %c0_i32 : i32, i32
  }
  func.func @transform_1(%arg0: i32) -> (i32, i32) {
    %c0_i32 = arith.constant 0 : i32
    %c0_i32_0 = arith.constant 0 : i32
    %c0_i32_1 = arith.constant 0 : i32
    return %c0_i32, %c0_i32_0 : i32, i32
  }
  func.func @transform_2(%arg0: i32) -> (i32, i32) {
    %c0_i32 = arith.constant 0 : i32
    %c0_i32_0 = arith.constant 0 : i32
    %c0_i32_1 = arith.constant 0 : i32
    return %c0_i32, %c0_i32_0 : i32, i32
  }
  func.func @transform_3(%arg0: i32) -> (i32, i32) {
    %c0_i32 = arith.constant 0 : i32
    %c0_i32_0 = arith.constant 0 : i32
    %c0_i32_1 = arith.constant 0 : i32
    return %c0_i32, %c0_i32_0 : i32, i32
  }
  func.func @transform_4(%arg0: i32) -> (i32, i32) {
    %c0_i32 = arith.constant 0 : i32
    %c0_i32_0 = arith.constant 0 : i32
    %c0_i32_1 = arith.constant 0 : i32
    return %c0_i32, %c0_i32_0 : i32, i32
  }
  func.func @transform_5(%arg0: i32) -> (i32, i32) {
    %c0_i32 = arith.constant 0 : i32
    %c0_i32_0 = arith.constant 0 : i32
    %c0_i32_1 = arith.constant 0 : i32
    return %c0_i32, %c0_i32_0 : i32, i32
  }
  func.func @transform_6(%arg0: i32) -> (i32, i32) {
    %c0_i32 = arith.constant 0 : i32
    %c0_i32_0 = arith.constant 0 : i32
    %c0_i32_1 = arith.constant 0 : i32
    return %c0_i32, %c0_i32_0 : i32, i32
  }
  func.func @transform_7(%arg0: i32) -> (i32, i32) {
    %c0_i32 = arith.constant 0 : i32
    %c0_i32_0 = arith.constant 0 : i32
    return %arg0, %c0_i32 : i32, i32
  }
}

</mosaic_0001>

<bundles_post_ra>
// kernel: tpu_custom_call.1
= control target key start
LH: loop header
LB: loop body
LE: loop exit
PB: predicated region body
PF: predicated region fallthrough
CT: control target
= control target key end

     0   :  { %12 = vsyncpa [#allocation3], 0  ;;  %s1524_s0 = inlined_call_operand.hbm [shape: f32[512,128], index: 0, kind: input, shape index: {}]   ;;  %s1525_s1 = inlined_call_operand.hbm [shape: f32[128,128], index: 1, kind: input, shape index: {}]   ;;  %s1526_s2 = inlined_call_operand.hbm [shape: f32[128,128], index: 2, kind: input, shape index: {}]   ;;  %s1527_s3 = inlined_call_operand.hbm [shape: f32[128,128], index: 3, kind: input, shape index: {}]   ;;  %s1528_s4 = inlined_call_operand.vmem [shape: f32[1,128], index: 4, kind: input, shape index: {}]   ;;  %s1529_s5 = inlined_call_operand.vmem [shape: f32[1,128], index: 5, kind: input, shape index: {}]   ;;  %s1530_s6 = inlined_call_operand.vmem [shape: f32[1,128], index: 6, kind: input, shape index: {}]   ;;  %s1531_s7 = inlined_call_operand.hbm [shape: f32[512,128], index: 7, kind: output, shape index: {}]  }
   0x1   :  { %14 = vsyncpa [#allocation3 + $0x1], 0 }
   0x2   :  { %15 = vsyncpa [#allocation6], 0 }
   0x3   :  { %16 = vsyncpa [#allocation9], 0 }
   0x4   :  { %17 = vsyncpa [#allocation4], 0 }
   0x5   :  { %19 = vsyncpa [#allocation4 + $0x1], 0  ;;  %s1205_s24 = smov 0   ;;  %s1207_s25 = smov 0  }
   0x6   :  { %s1209_s26 = smov 0   ;;  %s1211_s27 = smov 0  }
   0x7 LB: > { %s1226_s28 = sadd.s32 4294967295, %s1154_s27   ;;  %s727_s29 = sadd.s32 4294967294, %s1154_s27   ;;  %s1154_s27 = sphi %s1211_s27, %s1556_s27   ;;  %s1150_s26 = sphi %s1209_s26, %s1555_s26   ;;  %s1146_s25 = sphi %s1207_s25, %s1554_s25   ;;  %s1142_s24 = sphi %s1205_s24, %s1553_s24  }
   0x8   : > { %p45_p0 = scmp.ne.s32.totalorder %s1146_s25, %s1142_s24  ;;  %p1532_p1 = scmp.eq.s32.totalorder %s1226_s28, 0 }
   0x9   : > { %p201_p3 = scmp.eq.s32.totalorder %s727_s29, 3  ;;  %p728_p5 = scmp.ge.s32.totalorder %s1154_s27, 1 }
   0xa   : > { %p1235_p4 = por %p1532_p1, %p45_p0  ;;  %p208_p7 = scmp.lt.s32.totalorder %s1154_s27, 5 }
   0xb   : > { %p1240_p6 = por %p201_p3, %p45_p0  ;;  %s1156_s10 = smov [#allocation5]  }
   0xc   : > { %s1536_s30 = scalar_select %p1235_p4, 1, 0 }
   0xd   : > { %s1537_s8 = scalar_select %p1240_p6, 1, 0 }
   0xe   : > { %p1245_p8 = pnand %p728_p5, %p208_p7  ;;  %s220_s11 = sshll.u32 %s1156_s10, 4  ;;  %s1249_s11 = int_to_ptr.vmem [resolvable:$true] %s220_s11 }
   0xf   : > { %1538 = sst [smem:[#allocation15_spill]] %s1537_s8  ;;  %s1157_s13 = smov [#allocation7]  }
  0x10   : > { %s1539_s9 = scalar_select %p1245_p8, 1, 0 }
  0x11   : > { %p901_p9 = pneg %p1245_p8  ;;  %s233_s14 = sshll.u32 %s1157_s13, 4  ;;  %s1259_s14 = int_to_ptr.vmem [resolvable:$true] %s233_s14 }
  0x12   : > { %s1158_s15 = smov [#allocation8]   ;;  %s966_s19 = scalar_lea.hbm %s1525_s1, 2048 }
  0x13   : > { %p1255_p10 = pnand %p901_p9, %p1532_p1  ;;  %s1261_s16 = sshll.u32 %s1158_s15, 4  ;;  %s247_s16 = int_to_ptr.vmem [resolvable:$true] %s1261_s16 }
  0x14   : > { %p967_p11 = scmp.ne.s32.totalorder %s1525_s1, %s966_s19  ;;  %p973_p3 = scmp.lt.u32.totalorder %s966_s19, %s1525_s1 }
  0x15   : > { %p1271_p12 = pneg %p1255_p10 }
  0x17   : > { %p969_p13 = pnand %p1271_p12, %p967_p11 }
  0x19   : > { %p970_p0 = pneg %p969_p13 }
  0x1b   : > { %p975_p5 = pnand %p973_p3, %p970_p0 }
  0x1d   : > { %978 = shalt.err (!%p975_p5)
}
  0x1e   : > { %s979_s10 = scalar_lea.vmem %s1249_s11, 2048  ;;  %p987_p2 = scmp.lt.s32.totalorder %s1249_s11, %s1249_s11 }
  0x1f   : > { %p980_p7 = scmp.ne.s32.totalorder %s1249_s11, %s979_s10  ;;  %p988_p6 = scmp.lt.s32.totalorder %s979_s10, %s979_s10 }
  0x21   : > { %p982_p9 = pnand %p980_p7, %p1271_p12  ;;  %p989_p11 = por %p988_p6, %p987_p2 }
  0x23   : > { %p983_p1 = pneg %p982_p9 }
  0x25   : > { %p990_p13 = pnand %p989_p11, %p983_p1 }
  0x27   : > { %993 = shalt.err (!%p990_p13)
}
  0x28   : > { %s1159_s13 = smov 128   ;;  %s1160_s15 = smov 8  }
  0x29   : > { %904 = dma.hbm_to_vmem [thread:$0]  (!%p1255_p10), %s1525_s1, 2048, %s1249_s11, [#allocation6], %s1159_s13, %s1159_s13, %s1160_s15  }
  0x2a   : > { %s994_s21 = scalar_lea.hbm %s1526_s2, 2048 }
  0x2b   : > { %p995_p1 = scmp.ne.s32.totalorder %s1526_s2, %s994_s21  ;;  %p1001_p0 = scmp.lt.u32.totalorder %s994_s21, %s1526_s2 }
  0x2d   : > { %p997_p2 = pnand %p995_p1, %p1271_p12 }
  0x2f   : > { %p998_p6 = pneg %p997_p2 }
  0x31   : > { %p1003_p3 = pnand %p1001_p0, %p998_p6 }
  0x33   : > { %1006 = shalt.err (!%p1003_p3)
}
  0x34   : > { %s1007_s11 = scalar_lea.vmem %s1259_s14, 2048  ;;  %p1015_p11 = scmp.lt.s32.totalorder %s1259_s14, %s1259_s14 }
  0x35   : > { %p1008_p5 = scmp.ne.s32.totalorder %s1259_s14, %s1007_s11  ;;  %p1016_p13 = scmp.lt.s32.totalorder %s1007_s11, %s1007_s11 }
  0x37   : > { %p1010_p7 = pnand %p1008_p5, %p1271_p12  ;;  %p1017_p1 = por %p1016_p13, %p1015_p11 }
  0x39   : > { %p1011_p9 = pneg %p1010_p7 }
  0x3b   : > { %p1018_p2 = pnand %p1017_p1, %p1011_p9 }
  0x3d   : > { %1021 = shalt.err (!%p1018_p2)
}
  0x3e   : > { %907 = dma.hbm_to_vmem [thread:$0]  (!%p1255_p10), %s1526_s2, 2048, %s1259_s14, [#allocation6], %s1159_s13, %s1159_s13, %s1160_s15  }
  0x3f   : > { %s1022_s20 = scalar_lea.hbm %s1527_s3, 2048 }
  0x40   : > { %p1023_p6 = scmp.ne.s32.totalorder %s1527_s3, %s1022_s20  ;;  %p1029_p5 = scmp.lt.u32.totalorder %s1022_s20, %s1527_s3 }
  0x42   : > { %p1025_p0 = pnand %p1023_p6, %p1271_p12 }
  0x44   : > { %p1026_p3 = pneg %p1025_p0 }
  0x46   : > { %p1031_p7 = pnand %p1029_p5, %p1026_p3 }
  0x48   : > { %1034 = shalt.err (!%p1031_p7)
}
  0x49   : > { %s1035_s11 = scalar_lea.vmem %s247_s16, 2048  ;;  %p1043_p1 = scmp.lt.s32.totalorder %s247_s16, %s247_s16 }
  0x4a   : > { %p1036_p9 = scmp.ne.s32.totalorder %s247_s16, %s1035_s11  ;;  %p1044_p2 = scmp.lt.s32.totalorder %s1035_s11, %s1035_s11 }
  0x4c   : > { %p1038_p11 = pnand %p1036_p9, %p1271_p12  ;;  %p1045_p4 = por %p1044_p2, %p1043_p1 }
  0x4e   : > { %p1039_p13 = pneg %p1038_p11 }
  0x50   : > { %p1046_p8 = pnand %p1045_p4, %p1039_p13 }
  0x52   : > { %1049 = shalt.err (!%p1046_p8)
}
  0x53   : > { %910 = dma.hbm_to_vmem [thread:$0]  (!%p1255_p10), %s1527_s3, 2048, %s247_s16, [#allocation9], %s1159_s13, %s1159_s13, %s1160_s15  }
  0x54   : > { %s1344_s22 = sadd.s32 1, %s1154_s27   ;;  %s32_s17 = sadd.s32 1, %s1150_s26 }
  0x55   : > { %s29_s12 = ssub.s32 %s1154_s27, %s1344_s22  ;;  %p39_p8 = scmp.ne.s32.totalorder %s1150_s26, %s1146_s25 }
  0x56   : > { %p30_p4 = scmp.eq.s32.totalorder %s29_s12, 0  ;;  %p40_p12 = scmp.eq.s32.totalorder %s1154_s27, 0 }
  0x57   : > { %p922_p6 = scmp.lt.s32.totalorder %s1154_s27, 4  ;;  %p1542_p3 = scmp.eq.s32.totalorder %s1226_s28, 3 }
  0x58   : > { %s1354_s18 = scalar_select %p30_p4, %s1150_s26, %s32_s17  }
  0x59   : > { %p41_p0 = por %p40_p12, %p39_p8  ;;  %p1358_p5 = por %p1542_p3, %p39_p8 }
  0x5a   : > { %s269_s20 = sand.u32 1, %s1150_s26   ;;  %s747_s21 = sshll.u32 %s1154_s27, 11 }
  0x5b   : > { %s733_s16 = sshll.u32 %s269_s20, 7  ;;  %s1367_s10 = scalar_lea.hbm %s1524_s0, %s747_s21 }
  0x5c   : > { %s273_s11 = scalar_lea.vmem [#allocation2], %s733_s16  ;;  %p1369_p10 = pnand %p922_p6, %p41_p0 }
  0x5d   : > { %s280_s14 = sshll.u32 %s273_s11, 4  ;;  %s1375_s12 = scalar_lea.sflag [#allocation3], %s269_s20  ;;  %s1373_s14 = int_to_ptr.vmem [resolvable:$true] %s280_s14 }
  0x5e   : > { %s1050_s17 = scalar_lea.hbm %s1367_s10, 2048  ;;  %p1052_p9 = pneg %p1369_p10 }
  0x5f   : > { %p1051_p7 = scmp.ne.s32.totalorder %s1367_s10, %s1050_s17  ;;  %s1055_s23 = scalar_lea.hbm %s1524_s0, 8192 }
  0x60   : > { %p1056_p1 = scmp.lt.u32.totalorder %s1367_s10, %s1524_s0  ;;  %p1057_p2 = scmp.lt.u32.totalorder %s1055_s23, %s1050_s17 }
  0x61   : > { %p1053_p11 = pnand %p1052_p9, %p1051_p7  ;;  %p1059_p8 = scmp.lt.u32.totalorder %s1050_s17, %s1367_s10 }
  0x62   : > { %p1058_p4 = por %p1057_p2, %p1056_p1 }
  0x63   : > { %p1054_p13 = pneg %p1053_p11 }
  0x64   : > { %p1060_p12 = por %p1059_p8, %p1058_p4 }
  0x66   : > { %p1061_p6 = pnand %p1060_p12, %p1054_p13 }
  0x68   : > { %1064 = shalt.err (!%p1061_p6)
}
  0x69   : > { %s1065_s20 = scalar_lea.vmem %s1373_s14, 2048  ;;  %s1161_s21 = smov [#allocation2]  }
  0x6a   : > { %p1066_p0 = scmp.ne.s32.totalorder %s1373_s14, %s1065_s20  ;;  %s1070_s16 = sshll.u32 %s1161_s21, 4  ;;  %s1071_s16 = int_to_ptr.vmem [resolvable:$false] %s1070_s16 }
  0x6b   : > { %s1072_s29 = scalar_lea.vmem %s1071_s16, 4096  ;;  %p1073_p11 = scmp.lt.s32.totalorder %s1373_s14, %s1071_s16 }
  0x6c   : > { %p1068_p3 = pnand %p1066_p0, %p1052_p9  ;;  %p1074_p1 = scmp.lt.s32.totalorder %s1072_s29, %s1065_s20 }
  0x6e   : > { %p1069_p7 = pneg %p1068_p3  ;;  %p1075_p2 = por %p1074_p1, %p1073_p11 }
  0x70   : > { %p1076_p4 = pnand %p1075_p2, %p1069_p7 }
  0x72   : > { %1079 = shalt.err (!%p1076_p4)
}
  0x73   : > { %914 = dma.hbm_to_vmem [thread:$0]  (!%p1369_p10), %s1367_s10, 2048, %s1373_s14, %s1375_s12, %s1159_s13, %s1159_s13, %s1160_s15  }
  0x74   : > { %p1545_p9 = scmp.ne.s32.totalorder %s1539_s9, 0 }
  0x75   : > { %s1409_s17 = sand.u32 (!%p1545_p9), 1, %s1146_s25   ;;  %p1546_p13 = scmp.ne.s32.totalorder (!%p1545_p9), %s1536_s30, 0 }
  0x76   : > { %292 = sbr.rel (%p1545_p9) target bundleno = 416 (0x1a0), region = 48  ;;  %s737_s23 = sshll.u32 (!%p1545_p9), %s1409_s17, 7 }
  0x77   : > { %s295_s11 = scalar_lea.sflag (!%p1545_p9), [#allocation3], %s1409_s17  ;;  %s1415_s8 = scalar_lea.vmem (!%p1545_p9), [#allocation2], %s737_s23 }
  0x7d   : > { %1125 = dma.done.wait (%p1546_p13), %s295_s11, 2048  }
  0x7e   : > { %1127 = vsyncadd (%p1546_p13), %s295_s11, 4294965248  ;;  %p1547_p10 = scmp.eq.s32.totalorder %s1226_s28, 0 }
  0x80   : > { %1129 = dma.done.wait (%p1547_p10), [#allocation6], 4096   ;;  %p1548_p8 = pmov %p1547_p10 }
  0x82   : > { %1131 = vsyncadd (%p1548_p8), [#allocation6], 4294963200  ;;  %p1549_p12 = pmov %p1548_p8 }
  0x83   : > { %p1550_p6 = pmov %p1548_p8 }
  0x84   : > { %1133 = dma.done.wait (%p1549_p12), [#allocation9], 2048  }
  0x85   : > { %1135 = vsyncadd (%p1550_p6), [#allocation9], 4294965248  ;;  %v343_v0 = vld [vmem:[#allocation5] sm:$0xff]  ;;  %v344_v1 = vld [vmem:[#allocation5 + $0x8] sm:$0xff]  ;;  %s1456_s12 = scalar_lea.vmem [#allocation10], %s737_s23  ;;  %s748_s20 = sshll.u32 %s1226_s28, 11 }
  0x86   : > { %v359_v2 = vld [vmem:[#allocation8] sm:$0xff]  ;;  %v360_v3 = vld [vmem:[#allocation8 + $0x8] sm:$0xff]  ;;  %v345_v8 = vld [vmem:[#allocation5 + $0x10] sm:$0xff]  ;;  %s625_s21 = sshll.u32 %s1456_s12, 4  ;;  %s1475_s28 = scalar_lea.hbm %s1531_s7, %s748_s20  ;;  %s1477_s21 = int_to_ptr.vmem [resolvable:$true] %s625_s21 }
  0x87   : > { %v375_v4 = vld [vmem:[#allocation7] sm:$0xff]  ;;  %v376_v5 = vld [vmem:[#allocation7 + $0x8] sm:$0xff]  ;;  %v346_v9 = vld [vmem:[#allocation5 + $0x18] sm:$0xff]  ;;  %s612_s23 = scalar_lea.sflag [#allocation4], %s1409_s17  ;;  %s1080_s11 = scalar_lea.vmem %s1477_s21, 2048 }
  0x88   : > { %v391_v6 = vmul.f32 %v375_v4, %v359_v2  ;;  %v392_v7 = vmul.f32 %v376_v5, %v360_v3  ;;  %v361_v10 = vld [vmem:[#allocation8 + $0x10] sm:$0xff]  ;;  %v362_v11 = vld [vmem:[#allocation8 + $0x18] sm:$0xff]  ;;  %v347_v18 = vld [vmem:[#allocation5 + $0x20] sm:$0xff]  ;;  %p1081_p0 = scmp.ne.s32.totalorder %s1477_s21, %s1080_s11 }
  0x89   : > { %v377_v12 = vld [vmem:[#allocation7 + $0x10] sm:$0xff]  ;;  %v378_v13 = vld [vmem:[#allocation7 + $0x18] sm:$0xff]  ;;  %v363_v19 = vld [vmem:[#allocation8 + $0x20] sm:$0xff] }
  0x8a   : > { %v407_v14 = vadd.f32 %v391_v6, %v343_v0  ;;  %v408_v15 = vadd.f32 %v392_v7, %v344_v1  ;;  %v393_v16 = vmul.f32 %v377_v12, %v361_v10  ;;  %v394_v17 = vmul.f32 %v378_v13, %v362_v11  ;;  %v364_v20 = vld [vmem:[#allocation8 + $0x28] sm:$0xff]  ;;  %v379_v21 = vld [vmem:[#allocation7 + $0x20] sm:$0xff]  ;;  %v349_v28 = vld [vmem:[#allocation5 + $0x30] sm:$0xff]  ;;  %p1082_p3 = pnand %p1081_p0, %p1358_p5 }
  0x8b   : > { %v380_v22 = vld [vmem:[#allocation7 + $0x28] sm:$0xff]  ;;  %v395_v27 = vmul.f32 %v379_v21, %v363_v19  ;;  %v365_v29 = vld [vmem:[#allocation8 + $0x30] sm:$0xff]  ;;  %v366_v31 = vld [vmem:[#allocation8 + $0x38] sm:$0xff] }
  0x8c   : > { %v837_v23 = vpack.c.bf16 %v408_v15, %v407_v14  ;;  %v409_v24 = vadd.f32 %v393_v16, %v345_v8  ;;  %v410_v25 = vadd.f32 %v394_v17, %v346_v9  ;;  %v348_v26 = vld [vmem:[#allocation5 + $0x28] sm:$0xff]  ;;  %v396_v30 = vmul.f32 %v380_v22, %v364_v20  ;;  %v381_v32 = vld [vmem:[#allocation7 + $0x30] sm:$0xff]  ;;  %v382_v33 = vld [vmem:[#allocation7 + $0x38] sm:$0xff]  ;;  %p1083_p7 = pneg %p1082_p3 }
  0x8d   : > { %v411_v35 = vadd.f32 %v395_v27, %v347_v18  ;;  %v350_v36 = vld [vmem:[#allocation5 + $0x38] sm:$0xff]  ;;  %v397_v37 = vmul.f32 %v381_v32, %v365_v29  ;;  %v367_v38 = vld [vmem:[#allocation8 + $0x40] sm:$0xff]  ;;  %v398_v40 = vmul.f32 %v382_v33, %v366_v31  ;;  %v368_v41 = vld [vmem:[#allocation8 + $0x48] sm:$0xff] }
  0x8e   : > { %838 = vmatprep.subr.bf16.mxu0 %v837_v23  ;;  %869 = vmatprep.subr.bf16.mxu1 %v837_v23  ;;  %v841_v34 = vpack.c.bf16 %v410_v25, %v409_v24  ;;  %v412_v39 = vadd.f32 %v396_v30, %v348_v26  ;;  %v383_v42 = vld [vmem:[#allocation7 + $0x40] sm:$0xff]  ;;  %v384_v43 = vld [vmem:[#allocation7 + $0x48] sm:$0xff]  ;;  %v369_v49 = vld [vmem:[#allocation8 + $0x50] sm:$0xff] }
  0x8f   : > { %840 = vmatpush3.bf16.msra.mxu0 %v837_v23  ;;  %877 = vmatpush3.bf16.msra.mxu1 %v837_v23  ;;  %v413_v44 = vadd.f32 %v397_v37, %v349_v28  ;;  %v351_v45 = vld [vmem:[#allocation5 + $0x40] sm:$0xff]  ;;  %v352_v46 = vld [vmem:[#allocation5 + $0x48] sm:$0xff]  ;;  %v399_v47 = vmul.f32 %v383_v42, %v367_v38  ;;  %v400_v48 = vmul.f32 %v384_v43, %v368_v41  ;;  %v370_v52 = vld [vmem:[#allocation8 + $0x58] sm:$0xff] }
  0x90   : > { %842 = vmatprep.subr.bf16.mxu0 %v841_v34  ;;  %870 = vmatprep.subr.bf16.mxu1 %v841_v34  ;;  %v845_v50 = vpack.c.bf16 %v412_v39, %v411_v35  ;;  %v414_v51 = vadd.f32 %v398_v40, %v350_v36  ;;  %v385_v53 = vld [vmem:[#allocation7 + $0x50] sm:$0xff]  ;;  %v386_v54 = vld [vmem:[#allocation7 + $0x58] sm:$0xff]  ;;  %v371_v62 = vld [vmem:[#allocation8 + $0x60] sm:$0xff]  ;;  %v445_v40 = vlaneseq }
  0x91   : > { %v401_v55 = vmul.f32 %v385_v53, %v369_v49  ;;  %v402_v56 = vmul.f32 %v386_v54, %v370_v52  ;;  %v415_v58 = vadd.f32 %v399_v47, %v351_v45  ;;  %v416_v59 = vadd.f32 %v400_v48, %v352_v46  ;;  %v353_v60 = vld [vmem:[#allocation5 + $0x50] sm:$0xff]  ;;  %v354_v61 = vld [vmem:[#allocation5 + $0x58] sm:$0xff]  ;;  %v372_v63 = vld [vmem:[#allocation8 + $0x68] sm:$0xff] }
  0x92   : > { %v849_v57 = vpack.c.bf16 %v414_v51, %v413_v44  ;;  %v387_v0 = vld [vmem:[#allocation7 + $0x60] sm:$0xff]  ;;  %v388_v1 = vld [vmem:[#allocation7 + $0x68] sm:$0xff]  ;;  %v373_v10 = vld [vmem:[#allocation8 + $0x70] sm:$0xff]  ;;  %v446_v44 = vshrl.u32 %v445_v40, 7 }
  0x93   : > { %844 = vmatpush3.bf16.msra.mxu0 %v841_v34  ;;  %878 = vmatpush3.bf16.msra.mxu1 %v841_v34  ;;  %v428_v2 = vld [vmem:[%s1415_s8] sm:$0xff]  ;;  %v417_v4 = vadd.f32 %v401_v55, %v353_v60  ;;  %v418_v5 = vadd.f32 %v402_v56, %v354_v61  ;;  %v853_v6 = vpack.c.bf16 %v416_v59, %v415_v58  ;;  %v389_v11 = vld [vmem:[#allocation7 + $0x70] sm:$0xff]  ;;  %v356_v12 = vld [vmem:[#allocation5 + $0x68] sm:$0xff] }
  0x94   : > { %846 = vmatprep.subr.bf16.mxu0 %v845_v50  ;;  %871 = vmatprep.subr.bf16.mxu1 %v845_v50  ;;  %v436_v3 = vld [vmem:[%s1415_s8 + $0x40] sm:$0xff]  ;;  %v403_v8 = vmul.f32 %v387_v0, %v371_v62  ;;  %v404_v9 = vmul.f32 %v388_v1, %v372_v63  ;;  %v374_v13 = vld [vmem:[#allocation8 + $0x78] sm:$0xff]  ;;  %v405_v16 = vmul.f32 %v389_v11, %v373_v10  ;;  %v357_v20 = vld [vmem:[#allocation5 + $0x70] sm:$0xff]  ;;  %v447_v47 = vsub.s32 0, %v446_v44 }
  0x95   : > { %v355_v7 = vld [vmem:[#allocation5 + $0x60] sm:$0xff]  ;;  %v390_v14 = vld [vmem:[#allocation7 + $0x78] sm:$0xff]  ;;  %813 = vmatprep.mubr.f32.mxu0 %v428_v2  ;;  %825 = vmatprep.mubr.f32.mxu1 %v436_v3  ;;  %v857_v15 = vpack.c.bf16 %v418_v5, %v417_v4  ;;  %v429_v26 = vld [vmem:[%s1415_s8 + $0x8] sm:$0xff] }
  0x96   : > { %v419_v17 = vadd.f32 %v403_v8, %v355_v7  ;;  %v420_v18 = vadd.f32 %v404_v9, %v356_v12  ;;  %v406_v19 = vmul.f32 %v390_v14, %v374_v13  ;;  %v358_v21 = vld [vmem:[#allocation5 + $0x78] sm:$0xff]  ;;  %v421_v23 = vadd.f32 %v405_v16, %v357_v20  ;;  %v437_v27 = vld [vmem:[%s1415_s8 + $0x48] sm:$0xff]  ;;  %v430_v28 = vld [vmem:[%s1415_s8 + $0x10] sm:$0xff] }
  0x97   : > { %848 = vmatpush3.bf16.msra.mxu0 %v845_v50  ;;  %879 = vmatpush3.bf16.msra.mxu1 %v845_v50  ;;  %v438_v29 = vld [vmem:[%s1415_s8 + $0x50] sm:$0xff]  ;;  %v431_v30 = vld [vmem:[%s1415_s8 + $0x18] sm:$0xff]  ;;  %v432_v32 = vld [vmem:[%s1415_s8 + $0x20] sm:$0xff] }
  0x98   : > { %850 = vmatprep.subr.bf16.mxu0 %v849_v57  ;;  %872 = vmatprep.subr.bf16.mxu1 %v849_v57  ;;  %v861_v22 = vpack.c.bf16 %v420_v18, %v419_v17  ;;  %v422_v24 = vadd.f32 %v406_v19, %v358_v21  ;;  %v439_v31 = vld [vmem:[%s1415_s8 + $0x58] sm:$0xff]  ;;  %v440_v33 = vld [vmem:[%s1415_s8 + $0x60] sm:$0xff]  ;;  %v433_v34 = vld [vmem:[%s1415_s8 + $0x28] sm:$0xff] }
  0x99   : > { %v441_v35 = vld [vmem:[%s1415_s8 + $0x68] sm:$0xff]  ;;  %v434_v36 = vld [vmem:[%s1415_s8 + $0x30] sm:$0xff]  ;;  %v435_v38 = vld [vmem:[%s1415_s8 + $0x38] sm:$0xff] }
  0x9a   : > { %v865_v25 = vpack.c.bf16 %v422_v24, %v421_v23  ;;  %v442_v37 = vld [vmem:[%s1415_s8 + $0x70] sm:$0xff]  ;;  %v443_v39 = vld [vmem:[%s1415_s8 + $0x78] sm:$0xff]  ;;  %v424_v41 = vld [vmem:[%s1530_s6] sm:$0x1]  ;;  %s1162_s8 = smov [#allocation10]  }
  0x9b   : > { %852 = vmatpush3.bf16.msra.mxu0 %v849_v57  ;;  %880 = vmatpush3.bf16.msra.mxu1 %v849_v57  ;;  %v425_v42 = vld [vmem:[%s1529_s5] sm:$0x1]  ;;  %s1084_s30 = sshll.u32 %s1162_s8, 4  ;;  %s1085_s30 = int_to_ptr.vmem [resolvable:$false] %s1084_s30 }
  0x9c   : > { %854 = vmatprep.subr.bf16.mxu0 %v853_v6  ;;  %873 = vmatprep.subr.bf16.mxu1 %v853_v6  ;;  %v426_v43 = vmul.f32 %v425_v42, %v424_v41  ;;  %v423_v45 = vld [vmem:[%s1528_s4] sm:$0x1]  ;;  %s1086_s9 = scalar_lea.vmem %s1085_s30, 4096  ;;  %p1087_p11 = scmp.lt.s32.totalorder %s1477_s21, %s1085_s30 }
  0x9d   : > { %p1088_p1 = scmp.lt.s32.totalorder %s1086_s9, %s1080_s11 }
  0x9e   : > { %v427_v46 = vadd.f32 %v426_v43, %v423_v45 }
  0x9f   : > { %856 = vmatpush3.bf16.msra.mxu0 %v853_v6  ;;  %881 = vmatpush3.bf16.msra.mxu1 %v853_v6  ;;  %p1089_p2 = por %p1088_p1, %p1087_p11 }
  0xa0   : > { %858 = vmatprep.subr.bf16.mxu0 %v857_v15  ;;  %874 = vmatprep.subr.bf16.mxu1 %v857_v15  ;;  %v448_v48 = vrot.slane %v427_v46, %v447_v47 }
  0xa1   : > { %p1090_p4 = pnand %p1089_p2, %p1083_p7 }
  0xa3   : > { %860 = vmatpush3.bf16.msra.mxu0 %v857_v15  ;;  %882 = vmatpush3.bf16.msra.mxu1 %v857_v15 }
  0xa4   : > { %862 = vmatprep.subr.bf16.mxu0 %v861_v22  ;;  %875 = vmatprep.subr.bf16.mxu1 %v861_v22 }
  0xa7   : > { %864 = vmatpush3.bf16.msra.mxu0 %v861_v22  ;;  %883 = vmatpush3.bf16.msra.mxu1 %v861_v22 }
  0xa8   : > { %866 = vmatprep.subr.bf16.mxu0 %v865_v25  ;;  %876 = vmatprep.subr.bf16.mxu1 %v865_v25 }
  0xab   : > { %868 = vmatpush3.bf16.msra.mxu0 %v865_v25  ;;  %884 = vmatpush3.bf16.msra.mxu1 %v865_v25 }
  0xae   : > { %814 = vmatmul.mubr.f32.vlgmr.msra.gmra.mrb[0].mxu0 %v429_v26  ;;  %826 = vmatmul.mubr.f32.vlgmr.msra.gmra.mrb[0].mxu1 %v437_v27 }
  0xaf   : > { %816 = vmatprep.mubr.f32.mxu0 %v430_v28  ;;  %828 = vmatprep.mubr.f32.mxu1 %v438_v29 }
  0xb2   : > { %817 = vmatmul.mubr.f32.gmra.mrb[2].mxu0 %v431_v30  ;;  %829 = vmatmul.mubr.f32.gmra.mrb[2].mxu1 %v439_v31 }
  0xb3   : > { %819 = vmatprep.mubr.f32.mxu0 %v432_v32  ;;  %831 = vmatprep.mubr.f32.mxu1 %v440_v33 }
  0xb6   : > { %820 = vmatmul.mubr.f32.gmra.mrb[4].mxu0 %v433_v34  ;;  %832 = vmatmul.mubr.f32.gmra.mrb[4].mxu1 %v441_v35 }
  0xb7   : > { %822 = vmatprep.mubr.f32.mxu0 %v434_v36  ;;  %834 = vmatprep.mubr.f32.mxu1 %v442_v37 }
  0xba   : > { %823 = vmatmul.mubr.f32.gmra.mrb[6].mxu0 %v435_v38  ;;  %835 = vmatmul.mubr.f32.gmra.mrb[6].mxu1 %v443_v39 }
 0x181   : > { %v815_v49 = vpop.f32.mrb[0].mxu0  ;;  %v827_v50 = vpop.f32.mrb[0].mxu1 }
 0x182   : > { %v522_v51 = vadd.f32 %v815_v49, %v448_v48  ;;  %v562_v52 = vadd.f32 %v827_v50, %v448_v48  ;;  %v516_v53 = vpop.f32.mrb[1].mxu0  ;;  %v556_v54 = vpop.f32.mrb[1].mxu1 }
 0x183   : > { %v517_v55 = vadd.f32 %v516_v53, %v448_v48  ;;  %v557_v56 = vadd.f32 %v556_v54, %v448_v48 }
 0x184   : > { %596 = vst [vmem:[%s1456_s12 + $0x8] sm:$0xff] %v522_v51  ;;  %604 = vst [vmem:[%s1456_s12 + $0x48] sm:$0xff] %v562_v52 }
 0x185   : > { %595 = vst [vmem:[%s1456_s12] sm:$0xff] %v517_v55  ;;  %603 = vst [vmem:[%s1456_s12 + $0x40] sm:$0xff] %v557_v56  ;;  %v818_v57 = vpop.f32.mrb[2].mxu0  ;;  %v830_v58 = vpop.f32.mrb[2].mxu1 }
 0x186   : > { %v532_v59 = vadd.f32 %v818_v57, %v448_v48  ;;  %v572_v60 = vadd.f32 %v830_v58, %v448_v48  ;;  %v526_v61 = vpop.f32.mrb[3].mxu0  ;;  %v566_v62 = vpop.f32.mrb[3].mxu1 }
 0x187   : > { %v527_v63 = vadd.f32 %v526_v61, %v448_v48  ;;  %v567_v0 = vadd.f32 %v566_v62, %v448_v48 }
 0x188   : > { %598 = vst [vmem:[%s1456_s12 + $0x18] sm:$0xff] %v532_v59  ;;  %606 = vst [vmem:[%s1456_s12 + $0x58] sm:$0xff] %v572_v60 }
 0x189   : > { %597 = vst [vmem:[%s1456_s12 + $0x10] sm:$0xff] %v527_v63  ;;  %605 = vst [vmem:[%s1456_s12 + $0x50] sm:$0xff] %v567_v0  ;;  %v821_v1 = vpop.f32.mrb[4].mxu0  ;;  %v833_v2 = vpop.f32.mrb[4].mxu1 }
 0x18a   : > { %v542_v3 = vadd.f32 %v821_v1, %v448_v48  ;;  %v582_v4 = vadd.f32 %v833_v2, %v448_v48  ;;  %v536_v5 = vpop.f32.mrb[5].mxu0  ;;  %v576_v6 = vpop.f32.mrb[5].mxu1 }
 0x18b   : > { %v537_v7 = vadd.f32 %v536_v5, %v448_v48  ;;  %v577_v8 = vadd.f32 %v576_v6, %v448_v48 }
 0x18c   : > { %600 = vst [vmem:[%s1456_s12 + $0x28] sm:$0xff] %v542_v3  ;;  %608 = vst [vmem:[%s1456_s12 + $0x68] sm:$0xff] %v582_v4 }
 0x18d   : > { %599 = vst [vmem:[%s1456_s12 + $0x20] sm:$0xff] %v537_v7  ;;  %607 = vst [vmem:[%s1456_s12 + $0x60] sm:$0xff] %v577_v8  ;;  %v824_v9 = vpop.f32.mrb[6].mxu0  ;;  %v836_v10 = vpop.f32.mrb[6].mxu1 }
 0x18e   : > { %v552_v11 = vadd.f32 %v824_v9, %v448_v48  ;;  %v592_v12 = vadd.f32 %v836_v10, %v448_v48  ;;  %v546_v13 = vpop.f32.mrb[7].mxu0  ;;  %v586_v14 = vpop.f32.mrb[7].mxu1 }
 0x18f   : > { %v547_v15 = vadd.f32 %v546_v13, %v448_v48  ;;  %v587_v16 = vadd.f32 %v586_v14, %v448_v48 }
 0x190   : > { %602 = vst [vmem:[%s1456_s12 + $0x38] sm:$0xff] %v552_v11  ;;  %610 = vst [vmem:[%s1456_s12 + $0x78] sm:$0xff] %v592_v12 }
 0x191   : > { %601 = vst [vmem:[%s1456_s12 + $0x30] sm:$0xff] %v547_v15  ;;  %609 = vst [vmem:[%s1456_s12 + $0x70] sm:$0xff] %v587_v16 }
 0x192   : > { %1093 = shalt.err (!%p1090_p4)
}
 0x193   : > { %s1094_s13 = scalar_lea.hbm %s1475_s28, 2048  ;;  %s1098_s14 = scalar_lea.hbm %s1531_s7, 8192 }
 0x194   : > { %p1095_p9 = scmp.ne.s32.totalorder %s1475_s28, %s1094_s13  ;;  %p1099_p8 = scmp.lt.u32.totalorder %s1475_s28, %s1531_s7 }
 0x195   : > { %p1100_p12 = scmp.lt.u32.totalorder %s1098_s14, %s1094_s13  ;;  %p1102_p0 = scmp.lt.u32.totalorder %s1094_s13, %s1475_s28 }
 0x196   : > { %p1096_p13 = pnand %p1095_p9, %p1358_p5 }
 0x197   : > { %p1101_p6 = por %p1100_p12, %p1099_p8 }
 0x198   : > { %p1097_p10 = pneg %p1096_p13 }
 0x199   : > { %p1103_p3 = por %p1102_p0, %p1101_p6 }
 0x19b   : > { %p1104_p7 = pnand %p1103_p3, %p1097_p10 }
 0x19d   : > { %1107 = shalt.err (!%p1104_p7)
}
 0x19e   : > { %s1163_s16 = smov 128   ;;  %s1164_s29 = smov 8  }
 0x19f   : > { %899 = dma.vmem_to_hbm [thread:$0]  (%p1358_p5), %s1477_s21, 2048, %s1475_s28, %s612_s23, %s1163_s16, %s1163_s16, %s1164_s29  }
 0x1a0 PF: > { %s1551_s11 = sld [smem:[#allocation15_spill]]  ;;  %p926_p11 = scmp.ge.s32.totalorder %s1154_s27, 2 }
 0x1a1   : > { %s640_s8 = sand.u32 1, %s1142_s24  }
 0x1a2   : > { %s641_s30 = scalar_lea.sflag [#allocation4], %s640_s8 }
 0x1a6   : > { %p1552_p1 = scmp.ne.s32.totalorder %s1551_s11, 0 }
 0x1a8   : > { %p916_p2 = pnand %p926_p11, %p1552_p1 }
 0x1aa   : > { %1137 = dma.done.wait (!%p916_p2), %s641_s30, 2048  }
 0x1ab   : > { %1139 = vsyncadd (!%p916_p2), %s641_s30, 4294965248  ;;  %p22_p4 = scmp.ge.s32.totalorder %s1344_s22, 6   ;;  %s1553_s24 = smov %s1146_s25 }
 0x1ac   : > { %s1554_s25 = smov %s1150_s26  ;;  %s1555_s26 = smov %s1354_s18 }
 0x1ad   : > { %s1556_s27 = smov %s1344_s22  ;;  %24 = sbr.rel (!%p22_p4) target bundleno = 7 (0x7), region = 105 }
 0x1b4   :  { %646 = vsyncpa [#allocation3], 1 }
 0x1b5   :  { %648 = vsyncpa [#allocation3 + $0x1], 1 }
 0x1b6   :  { %649 = vsyncpa [#allocation6], 1 }
 0x1b7   :  { %650 = vsyncpa [#allocation9], 1 }
 0x1b8   :  { %651 = vsyncpa [#allocation4], 1 }
 0x1b9   :  { %653 = vsyncpa [#allocation4 + $0x1], 1 }

</bundles_post_ra>
